<compile_context>
chip_gen: v7x
topology: tpu7x:2x2x1
jax: 0.10.0
libtpu: 0.0.40
codegen_flags: <defaults>
</compile_context>

<pallas_src>
import jax
import jax.numpy as jnp
from jax.experimental import pallas as pl
from jax.experimental.pallas import tpu as pltpu

NUM_CLASSES = 10
LANE_PAD = 128          # class dim padded to one full lane group (keep at 128)
MAX_TILE_B = 1024       # batch-tile cap
MAX_TILE_K = 8192       # feature-tile cap (f32 x tile at 1024x8192 = 32 MiB)


def _round_up(x, m):
    return (x + m - 1) // m * m


def _cdiv(a, b):
    return (a + b - 1) // b


def _vmem_budget_bytes():
    """~3/4 of physical VMEM (v5e/v6e: 128 MiB -> 96 MiB, v7x: 64 MiB -> 48 MiB)."""
    cap = 64 * 1024 * 1024
    try:
        info = pltpu.get_tpu_info()
        cap = int(getattr(info, "vmem_capacity_bytes", cap))
    except Exception:
        pass
    return cap * 3 // 4


def _feature_tiling(d):
    """(tile_k, nk, d_pad) with K padding bounded by ~nk*128 (no tile_k blowup)."""
    d_128 = _round_up(max(d, 1), 128)
    nk = _cdiv(d_128, MAX_TILE_K)
    tile_k = _round_up(_cdiv(d_128, nk), 128)
    d_pad = nk * tile_k
    return tile_k, nk, d_pad


def _linear_probe_kernel(x_ref, w_ref, b_ref, o_ref):
    # x_ref: (TILE_B, TILE_K) f32  (streamed straight from HBM, no wrapper cast)
    # w_ref: (TILE_K, 128) bf16    b_ref: (1, 128) f32
    # o_ref: (TILE_B, 128) f32     -- resident across K, doubles as accumulator
    k = pl.program_id(1)

    @pl.when(k == 0)
    def _():
        o_ref[...] = jnp.broadcast_to(b_ref[...], o_ref.shape)

    # In-kernel bf16 cast is free in this DMA-bound regime; f32 accumulation.
    o_ref[...] += jnp.dot(x_ref[...].astype(jnp.bfloat16), w_ref[...],
                          preferred_element_type=jnp.float32)


def prepare_params(weight, bias):
    """One-time parameter prep (do NOT call per forward step).

    weight: (10, D) f32, bias: (10,) f32  ->
      w_prep: (D_pad, 128) bf16   (transposed, zero-padded)
      b_prep: (1, 128) f32        (zero-padded)
    """
    num_classes, d = weight.shape
    _, _, d_pad = _feature_tiling(d)
    w_prep = jnp.zeros((d_pad, LANE_PAD), jnp.bfloat16)
    w_prep = w_prep.at[:d, :num_classes].set(weight.T.astype(jnp.bfloat16))
    b_prep = jnp.zeros((1, LANE_PAD), jnp.float32)
    b_prep = b_prep.at[0, :num_classes].set(bias.astype(jnp.float32))
    return w_prep, b_prep


def linear_probe_forward(x_nchw, w_prep, b_prep, num_classes=NUM_CLASSES):
    """x_nchw: (B, C, H, W) f32; w_prep: (D_pad, 128) bf16; b_prep: (1, 128) f32."""
    B = x_nchw.shape[0]
    D = 1
    for s in x_nchw.shape[1:]:
        D *= s

    tile_k, nk, D_pad = _feature_tiling(D)
    assert w_prep.shape == (D_pad, LANE_PAD), "prepare_params / forward tiling mismatch"

    # Flatten is a free reshape (same NCHW row-major order as nn.Flatten).
    # x stays f32 -> the kernel is the only pass over x's HBM bytes.
    x2d = x_nchw.reshape(B, D)

    budget = _vmem_budget_bytes()
    B_pad = _round_up(B, 8)

    # Largest batch tile whose double-buffered working set fits the VMEM budget.
    fixed = 2 * tile_k * LANE_PAD * 2 + LANE_PAD * 4          # W (bf16, 2 bufs) + bias
    per_row = 2 * tile_k * 4 + 2 * LANE_PAD * 4               # x (f32, 2 bufs) + out (f32, 2 bufs)
    tile_b = min(B_pad, MAX_TILE_B, max(8, (budget - fixed) // per_row))
    tile_b = max(8, (tile_b // 8) * 8)

    # v7x has 2 TensorCores: make sure the "parallel" batch axis has >= 2 tiles
    # when the batch is big enough (harmless extra grid step on v5e/v6e).
    if B_pad >= 2 * 8 and tile_b >= B_pad:
        tile_b = max(8, _round_up(_cdiv(B_pad, 2), 8))

    nb = _cdiv(B_pad, tile_b)
    B_pad = nb * tile_b

    # Zero-pad only when shapes demand it; keeping the padded K region exactly
    # zero avoids any NaN*0 hazard against W's zero-padded rows.
    if (B_pad, D_pad) != (B, D):
        x2d = jnp.pad(x2d, ((0, B_pad - B), (0, D_pad - D)))

    # W is re-fetched per batch tile only when the K axis is actually tiled.
    w_bytes = D_pad * LANE_PAD * 2 * (nb if nk > 1 else 1)
    cost = pl.CostEstimate(
        flops=2 * B_pad * D_pad * LANE_PAD,
        transcendentals=0,
        bytes_accessed=(B_pad * D_pad * 4        # x (f32)
                        + w_bytes                # W (bf16)
                        + B_pad * LANE_PAD * 4   # out (f32)
                        + LANE_PAD * 4))         # bias

    out = pl.pallas_call(
        _linear_probe_kernel,
        out_shape=jax.ShapeDtypeStruct((B_pad, LANE_PAD), jnp.float32),
        grid_spec=pltpu.PrefetchScalarGridSpec(
            num_scalar_prefetch=0,
            grid=(nb, nk),
            in_specs=[
                pl.BlockSpec((tile_b, tile_k), lambda i, k: (i, k)),
                pl.BlockSpec((tile_k, LANE_PAD), lambda i, k: (k, 0)),
                pl.BlockSpec((1, LANE_PAD), lambda i, k: (0, 0)),
            ],
            out_specs=pl.BlockSpec((tile_b, LANE_PAD), lambda i, k: (i, 0)),
        ),
        compiler_params=pltpu.CompilerParams(
            dimension_semantics=("parallel", "arbitrary"),
            vmem_limit_bytes=budget),
        cost_estimate=cost,
    )(x2d, w_prep, b_prep)

    # Strip batch padding and the lane padding of the class dimension.
    return out[:B, :num_classes]


def init_params(key, input_dim):
    # Deterministic init mimicking nn.Linear's default U(-1/sqrt(D), 1/sqrt(D))
    kw, kb = jax.random.split(key)
    bound = 1.0 / jnp.sqrt(jnp.float32(input_dim))
    weight = jax.random.uniform(
        kw, (NUM_CLASSES, input_dim), jnp.float32, minval=-bound, maxval=bound)
    bias = jax.random.uniform(
        kb, (NUM_CLASSES,), jnp.float32, minval=-bound, maxval=bound)
    return weight, bias


if __name__ == "__main__":
    key = jax.random.PRNGKey(0)
    kx, kp = jax.random.split(key)

    # Small shapes consistent with the module: x is (B, C, H, W), D = C*H*W.
    # NOTE: at B=2 the kernel is launch-overhead-bound; the tiling machinery
    # exists for realistic probe batches (hundreds/thousands of rows).
    B, C, H, W = 2, 4, 16, 16
    input_dim = C * H * W  # 1024

    x = jax.random.normal(kx, (B, C, H, W), jnp.float32)
    weight, bias = init_params(kp, input_dim)

    # One-time parameter preparation (hoisted out of the per-call forward).
    w_prep, b_prep = prepare_params(weight, bias)

    logits = linear_probe_forward(x, w_prep, b_prep)
    logits = jax.block_until_ready(logits)

    # Reference check (eval-mode dropout == identity). The kernel feeds the MXU
    # bf16 inputs with f32 accumulation, so compare against a bf16-input ref.
    x_bf = x.reshape(B, input_dim).astype(jnp.bfloat16).astype(jnp.float32)
    w_bf = weight.astype(jnp.bfloat16).astype(jnp.float32)
    ref = jnp.dot(x_bf, w_bf.T, precision=jax.lax.Precision.HIGHEST) + bias

    assert logits.shape == (B, NUM_CLASSES)
    assert jnp.allclose(logits, ref, atol=2e-3, rtol=2e-3), (
        jnp.max(jnp.abs(logits - ref)))

    print("KERNEL_OK")
</pallas_src>

<mosaic_0001>
module attributes {stable_mosaic.version = 11 : i64} {
  func.func @_linear_probe_kernel(%arg0: i32, %arg1: i32, %arg2: memref<8x1024xf32, #tpu.memory_space<vmem>>, %arg3: memref<1024x128xbf16, #tpu.memory_space<vmem>>, %arg4: memref<1x128xf32, #tpu.memory_space<vmem>>, %arg5: memref<8x128xf32, #tpu.memory_space<vmem>>) attributes {dimension_semantics = [#tpu.dimension_semantics<parallel>, #tpu.dimension_semantics<arbitrary>], iteration_bounds = array<i64: 1, 1>, scalar_prefetch = 0 : i64, scratch_operands = 0 : i64, tpu.core_type = #tpu.core_type<tc>, window_params = [{transform_indices = @transform_0, window_bounds = array<i64: 8, 1024>}, {transform_indices = @transform_1, window_bounds = array<i64: 1024, 128>}, {pipeline_mode = #tpu.pipeline_mode<synchronous>, transform_indices = @transform_2, window_bounds = array<i64: 1, 128>}, {transform_indices = @transform_3, window_bounds = array<i64: 8, 128>}]} {
    %c0_i32 = arith.constant 0 : i32
    %0 = arith.cmpi eq, %arg1, %c0_i32 : i32
    %1 = arith.extui %0 : i1 to i32
    %c0_i32_0 = arith.constant 0 : i32
    %2 = arith.cmpi ne, %1, %c0_i32_0 : i32
    scf.if %2 {
      %c0_8 = arith.constant 0 : index
      %c0_9 = arith.constant 0 : index
      %10 = vector.load %arg4[%c0_8, %c0_9] : memref<1x128xf32, #tpu.memory_space<vmem>>, vector<1x128xf32>
      %11 = vector.shape_cast %10 : vector<1x128xf32> to vector<1x128xf32>
      %12 = vector.broadcast %11 : vector<1x128xf32> to vector<8x128xf32>
      %c0_10 = arith.constant 0 : index
      %c0_11 = arith.constant 0 : index
      %13 = vector.load %arg5[%c0_10, %c0_11] : memref<8x128xf32, #tpu.memory_space<vmem>>, vector<8x128xf32>
      tpu.vector_store %arg5[%c0_10, %c0_11], %12 {strides = array<i32>} : memref<8x128xf32, #tpu.memory_space<vmem>>, vector<8x128xf32>,
    } else {
    }
    %c0 = arith.constant 0 : index
    %c0_1 = arith.constant 0 : index
    %3 = vector.load %arg5[%c0, %c0_1] : memref<8x128xf32, #tpu.memory_space<vmem>>, vector<8x128xf32>
    %c0_2 = arith.constant 0 : index
    %c0_3 = arith.constant 0 : index
    %4 = vector.load %arg2[%c0_2, %c0_3] : memref<8x1024xf32, #tpu.memory_space<vmem>>, vector<8x1024xf32>
    %5 = arith.truncf %4 : vector<8x1024xf32> to vector<8x1024xbf16>
    %c0_4 = arith.constant 0 : index
    %c0_5 = arith.constant 0 : index
    %6 = vector.load %arg3[%c0_4, %c0_5] : memref<1024x128xbf16, #tpu.memory_space<vmem>>, vector<1024x128xbf16>
    %cst = arith.constant dense<0.000000e+00> : vector<8x128xf32>
    %7 = tpu.matmul %5, %6, %cst {dimension_numbers = #tpu.dot_dimension_numbers<[1], [0], [0], [1], [0, 0, 1, 1], [], []>} : vector<8x1024xbf16>, vector<1024x128xbf16>, vector<8x128xf32> -> vector<8x128xf32>
    %8 = arith.addf %3, %7 : vector<8x128xf32>
    %c0_6 = arith.constant 0 : index
    %c0_7 = arith.constant 0 : index
    %9 = vector.load %arg5[%c0_6, %c0_7] : memref<8x128xf32, #tpu.memory_space<vmem>>, vector<8x128xf32>
    tpu.vector_store %arg5[%c0_6, %c0_7], %8 {strides = array<i32>} : memref<8x128xf32, #tpu.memory_space<vmem>>, vector<8x128xf32>,
    return
  }
  func.func @transform_0(%arg0: i32, %arg1: i32) -> (i32, i32) {
    %c0_i32 = arith.constant 0 : i32
    return %arg0, %arg1 : i32, i32
  }
  func.func @transform_1(%arg0: i32, %arg1: i32) -> (i32, i32) {
    %c0_i32 = arith.constant 0 : i32
    %c0_i32_0 = arith.constant 0 : i32
    return %arg1, %c0_i32 : i32, i32
  }
  func.func @transform_2(%arg0: i32, %arg1: i32) -> (i32, i32) {
    %c0_i32 = arith.constant 0 : i32
    %c0_i32_0 = arith.constant 0 : i32
    %c0_i32_1 = arith.constant 0 : i32
    return %c0_i32, %c0_i32_0 : i32, i32
  }
  func.func @transform_3(%arg0: i32, %arg1: i32) -> (i32, i32) {
    %c0_i32 = arith.constant 0 : i32
    %c0_i32_0 = arith.constant 0 : i32
    return %arg0, %c0_i32 : i32, i32
  }
}

</mosaic_0001>

<bundles_post_ra>
// kernel: tpu_custom_call.1
= control target key start
LH: loop header
LB: loop body
LE: loop exit
PB: predicated region body
PF: predicated region fallthrough
CT: control target
= control target key end

     0   :  { %8 = vsyncpa [#allocation3], 0  ;;  %s1126_s0 = inlined_call_operand.hbm [shape: f32[8,1024], index: 0, kind: input, shape index: {}]   ;;  %s1127_s1 = inlined_call_operand.hbm [shape: bf16[1024,128], index: 1, kind: input, shape index: {}]   ;;  %s1128_s2 = inlined_call_operand.vmem [shape: f32[1,128], index: 2, kind: input, shape index: {}]   ;;  %s1129_s3 = inlined_call_operand.hbm [shape: f32[8,128], index: 3, kind: output, shape index: {}]  }
   0x1   :  { %9 = vsyncpa [#allocation6], 0 }
   0x2   :  { %10 = vsyncpa [#allocation4], 0  ;;  %s1055_s12 = smov [#allocation2]   ;;  %s1056_s14 = smov [#allocation5]  }
   0x3   :  { %s17_s13 = sshll.u32 %s1055_s12, 4  ;;  %s26_s15 = sshll.u32 %s1056_s14, 4  ;;  %s18_s13 = int_to_ptr.vmem [resolvable:$true] %s17_s13  ;;  %s1080_s15 = int_to_ptr.vmem [resolvable:$true] %s26_s15 }
   0x4   :  { %s983_s18 = scalar_lea.hbm %s1126_s0, 1024 }
   0x5   :  { %p984_p0 = scmp.ne.s32.totalorder %s1126_s0, %s983_s18  ;;  %p987_p1 = scmp.lt.u32.totalorder %s983_s18, %s1126_s0 }
   0x7   :  { %p989_p2 = pnand %p987_p1, %p984_p0 }
   0x9   :  { %992 = shalt.err (!%p989_p2)
}
   0xa   :  { %s993_s23 = scalar_lea.vmem %s18_s13, 1024  ;;  %p998_p4 = scmp.lt.s32.totalorder %s18_s13, %s18_s13 }
   0xb   :  { %p994_p3 = scmp.ne.s32.totalorder %s18_s13, %s993_s23  ;;  %p999_p5 = scmp.lt.s32.totalorder %s993_s23, %s993_s23 }
   0xd   :  { %p1000_p6 = por %p999_p5, %p998_p4 }
   0xf   :  { %p1001_p7 = pnand %p1000_p6, %p994_p3 }
  0x11   :  { %1004 = shalt.err (!%p1001_p7)
}
  0x12   :  { %20 = dma.hbm_to_vmem [thread:$0]  %s1126_s0, 1024, %s18_s13, [#allocation3]  }
  0x13   :  { %s1005_s28 = scalar_lea.hbm %s1127_s1, 8192 }
  0x14   :  { %p1006_p8 = scmp.ne.s32.totalorder %s1127_s1, %s1005_s28  ;;  %p1009_p9 = scmp.lt.u32.totalorder %s1005_s28, %s1127_s1 }
  0x16   :  { %p1011_p10 = pnand %p1009_p9, %p1006_p8 }
  0x18   :  { %1014 = shalt.err (!%p1011_p10)
}
  0x19   :  { %s1015_s6 = scalar_lea.vmem %s1080_s15, 8192  ;;  %p1020_p12 = scmp.lt.s32.totalorder %s1080_s15, %s1080_s15 }
  0x1a   :  { %p1016_p11 = scmp.ne.s32.totalorder %s1080_s15, %s1015_s6  ;;  %p1021_p13 = scmp.lt.s32.totalorder %s1015_s6, %s1015_s6 }
  0x1c   :  { %p1022_p0 = por %p1021_p13, %p1020_p12 }
  0x1e   :  { %p1023_p1 = pnand %p1022_p0, %p1016_p11 }
  0x20   :  { %1026 = shalt.err (!%p1023_p1)
}
  0x21   :  { %s1057_s0 = smov 64   ;;  %s1058_s7 = smov 4  }
  0x22   :  { %32 = dma.hbm_to_vmem [thread:$0]  %s1127_s1, 8192, %s1080_s15, [#allocation6], %s1057_s0, %s1057_s0, %s1058_s7  }
  0x23   :  { %1049 = dma.done.wait [#allocation3], 1024  }
  0x24   :  { %1050 = vsyncadd [#allocation3], 4294966272 }
  0x25   :  { %1051 = dma.done.wait [#allocation6], 8192  }
  0x26   :  { %1052 = vsyncadd [#allocation6], 4294959104  ;;  %v919_v0 = vld [vmem:[#allocation5 + $0x40] sm:$0xff]   ;;  %v923_v4 = vld [vmem:[#allocation5 + $0x48] sm:$0xff]   ;;  %s1059_s11 = smov [#allocation7]  }
  0x27   :  { %v920_v1 = vld [vmem:[#allocation5 + $0xc0] sm:$0xff]   ;;  %826 = vmatprep.subr.bf16.mxu0 %v919_v0  ;;  %v924_v5 = vld [vmem:[#allocation5 + $0xc8] sm:$0xff]   ;;  %v927_v8 = vld [vmem:[#allocation5 + $0x50] sm:$0xff]   ;;  %s751_s12 = sshll.u32 %s1059_s11, 4  ;;  %s752_s12 = int_to_ptr.vmem [resolvable:$true] %s751_s12 }
  0x28   :  { %v921_v2 = vld [vmem:[#allocation5] sm:$0xff]   ;;  %848 = vmatprep.subr.bf16.mxu1 %v920_v1  ;;  %v925_v6 = vld [vmem:[#allocation5 + $0x8] sm:$0xff]   ;;  %v928_v9 = vld [vmem:[#allocation5 + $0xd0] sm:$0xff]   ;;  %s1027_s13 = scalar_lea.vmem %s752_s12, 128  ;;  %p1032_p3 = scmp.lt.s32.totalorder %s752_s12, %s752_s12 }
  0x29   :  { %v922_v3 = vld [vmem:[#allocation5 + $0x80] sm:$0xff]   ;;  %827 = vmatpush3.bf16.msra.mxu0 %v921_v2  ;;  %v926_v7 = vld [vmem:[#allocation5 + $0x88] sm:$0xff]   ;;  %v929_v10 = vld [vmem:[#allocation5 + $0x10] sm:$0xff]   ;;  %p1028_p2 = scmp.ne.s32.totalorder %s752_s12, %s1027_s13  ;;  %p1033_p4 = scmp.lt.s32.totalorder %s1027_s13, %s1027_s13 }
  0x2a   :  { %849 = vmatpush3.bf16.msra.mxu1 %v922_v3  ;;  %828 = vmatprep.subr.bf16.mxu0 %v923_v4  ;;  %v930_v11 = vld [vmem:[#allocation5 + $0x90] sm:$0xff]   ;;  %v931_v12 = vld [vmem:[#allocation5 + $0x58] sm:$0xff]   ;;  %v935_v16 = vld [vmem:[#allocation5 + $0x60] sm:$0xff]  }
  0x2b   :  { %850 = vmatprep.subr.bf16.mxu1 %v924_v5  ;;  %v932_v13 = vld [vmem:[#allocation5 + $0xd8] sm:$0xff]   ;;  %v936_v17 = vld [vmem:[#allocation5 + $0xe0] sm:$0xff]   ;;  %v939_v20 = vld [vmem:[#allocation5 + $0x68] sm:$0xff]   ;;  %p1034_p5 = por %p1033_p4, %p1032_p3 }
  0x2c   :  { %v933_v14 = vld [vmem:[#allocation5 + $0x18] sm:$0xff]   ;;  %v937_v18 = vld [vmem:[#allocation5 + $0x20] sm:$0xff]   ;;  %v940_v21 = vld [vmem:[#allocation5 + $0xe8] sm:$0xff]  }
  0x2d   :  { %829 = vmatpush3.bf16.msra.mxu0 %v925_v6  ;;  %v934_v15 = vld [vmem:[#allocation5 + $0x98] sm:$0xff]   ;;  %v938_v19 = vld [vmem:[#allocation5 + $0xa0] sm:$0xff]   ;;  %v941_v22 = vld [vmem:[#allocation5 + $0x28] sm:$0xff]   ;;  %p1035_p6 = pnand %p1034_p5, %p1028_p2 }
  0x2e   :  { %851 = vmatpush3.bf16.msra.mxu1 %v926_v7  ;;  %830 = vmatprep.subr.bf16.mxu0 %v927_v8  ;;  %v942_v23 = vld [vmem:[#allocation5 + $0xa8] sm:$0xff]   ;;  %v943_v24 = vld [vmem:[#allocation5 + $0x70] sm:$0xff]   ;;  %v947_v28 = vld [vmem:[#allocation5 + $0x78] sm:$0xff]  }
  0x2f   :  { %852 = vmatprep.subr.bf16.mxu1 %v928_v9  ;;  %v944_v25 = vld [vmem:[#allocation5 + $0xf0] sm:$0xff]   ;;  %v948_v29 = vld [vmem:[#allocation5 + $0xf8] sm:$0xff]   ;;  %v56_v32 = vld [vmem:[#allocation2 + $0x8] sm:$0xff] }
  0x30   :  { %v945_v26 = vld [vmem:[#allocation5 + $0x30] sm:$0xff]   ;;  %v949_v30 = vld [vmem:[#allocation5 + $0x38] sm:$0xff]   ;;  %v55_v34 = vld [vmem:[#allocation2] sm:$0xff]  ;;  %v64_v35 = vpack.c.bf16 %v56_v32, %v56_v32 }
  0x31   :  { %831 = vmatpush3.bf16.msra.mxu0 %v929_v10  ;;  %v946_v27 = vld [vmem:[#allocation5 + $0xb0] sm:$0xff]   ;;  %v950_v31 = vld [vmem:[#allocation5 + $0xb8] sm:$0xff]   ;;  %v63_v37 = vpack.c.bf16 %v55_v34, %v55_v34  ;;  %v951_v40 = vld [vmem:[#allocation5 + $0x140] sm:$0xff]  }
  0x32   :  { %853 = vmatpush3.bf16.msra.mxu1 %v930_v11  ;;  %832 = vmatprep.subr.bf16.mxu0 %v931_v12  ;;  %v58_v33 = vld [vmem:[#allocation2 + $0x18] sm:$0xff]  ;;  %v57_v38 = vld [vmem:[#allocation2 + $0x10] sm:$0xff]  ;;  %v952_v41 = vld [vmem:[#allocation5 + $0x1c0] sm:$0xff]  }
  0x33   :  { %854 = vmatprep.subr.bf16.mxu1 %v932_v13  ;;  %v66_v36 = vpack.c.bf16 %v58_v33, %v58_v33  ;;  %v65_v39 = vpack.c.bf16 %v57_v38, %v57_v38  ;;  %615 = vmatprep.mubr.bf16.mxu0 %v64_v35  ;;  %v953_v42 = vld [vmem:[#allocation5 + $0x100] sm:$0xff]   ;;  %v955_v44 = vld [vmem:[#allocation5 + $0x148] sm:$0xff]   ;;  %v959_v48 = vld [vmem:[#allocation5 + $0x150] sm:$0xff]  }
  0x34   :  { %v954_v43 = vld [vmem:[#allocation5 + $0x180] sm:$0xff]   ;;  %v956_v45 = vld [vmem:[#allocation5 + $0x1c8] sm:$0xff]   ;;  %v960_v49 = vld [vmem:[#allocation5 + $0x1d0] sm:$0xff]  }
  0x35   :  { %833 = vmatpush3.bf16.msra.mxu0 %v933_v14  ;;  %655 = vmatprep.mubr.bf16.mxu1 %v66_v36  ;;  %v957_v46 = vld [vmem:[#allocation5 + $0x108] sm:$0xff]   ;;  %v961_v50 = vld [vmem:[#allocation5 + $0x110] sm:$0xff]   ;;  %v963_v52 = vld [vmem:[#allocation5 + $0x158] sm:$0xff]  }
  0x36   :  { %855 = vmatpush3.bf16.msra.mxu1 %v934_v15  ;;  %834 = vmatprep.subr.bf16.mxu0 %v935_v16  ;;  %v958_v47 = vld [vmem:[#allocation5 + $0x188] sm:$0xff]   ;;  %v962_v51 = vld [vmem:[#allocation5 + $0x190] sm:$0xff]   ;;  %v964_v53 = vld [vmem:[#allocation5 + $0x1d8] sm:$0xff]  }
  0x37   :  { %856 = vmatprep.subr.bf16.mxu1 %v936_v17  ;;  %v965_v54 = vld [vmem:[#allocation5 + $0x118] sm:$0xff]   ;;  %v967_v56 = vld [vmem:[#allocation5 + $0x160] sm:$0xff]   ;;  %v971_v60 = vld [vmem:[#allocation5 + $0x168] sm:$0xff]  }
  0x38   :  { %v966_v55 = vld [vmem:[#allocation5 + $0x198] sm:$0xff]   ;;  %v968_v57 = vld [vmem:[#allocation5 + $0x1e0] sm:$0xff]   ;;  %v972_v61 = vld [vmem:[#allocation5 + $0x1e8] sm:$0xff]  }
  0x39   :  { %835 = vmatpush3.bf16.msra.mxu0 %v937_v18  ;;  %v969_v58 = vld [vmem:[#allocation5 + $0x120] sm:$0xff]   ;;  %v973_v62 = vld [vmem:[#allocation5 + $0x128] sm:$0xff]   ;;  %v975_v0 = vld [vmem:[#allocation5 + $0x170] sm:$0xff]  }
  0x3a   :  { %857 = vmatpush3.bf16.msra.mxu1 %v938_v19  ;;  %836 = vmatprep.subr.bf16.mxu0 %v939_v20  ;;  %v970_v59 = vld [vmem:[#allocation5 + $0x1a0] sm:$0xff]   ;;  %v974_v63 = vld [vmem:[#allocation5 + $0x1a8] sm:$0xff]   ;;  %v976_v1 = vld [vmem:[#allocation5 + $0x1f0] sm:$0xff]  }
  0x3b   :  { %858 = vmatprep.subr.bf16.mxu1 %v940_v21  ;;  %v977_v2 = vld [vmem:[#allocation5 + $0x130] sm:$0xff]   ;;  %v979_v4 = vld [vmem:[#allocation5 + $0x178] sm:$0xff]   ;;  %v60_v8 = vld [vmem:[#allocation2 + $0x28] sm:$0xff] }
  0x3c   :  { %v978_v3 = vld [vmem:[#allocation5 + $0x1b0] sm:$0xff]   ;;  %v980_v5 = vld [vmem:[#allocation5 + $0x1f8] sm:$0xff]   ;;  %v68_v10 = vpack.c.bf16 %v60_v8, %v60_v8  ;;  %v59_v12 = vld [vmem:[#allocation2 + $0x20] sm:$0xff] }
  0x3d   :  { %837 = vmatpush3.bf16.msra.mxu0 %v941_v22  ;;  %v981_v6 = vld [vmem:[#allocation5 + $0x138] sm:$0xff]   ;;  %v61_v13 = vld [vmem:[#allocation2 + $0x30] sm:$0xff]  ;;  %v67_v14 = vpack.c.bf16 %v59_v12, %v59_v12  ;;  %v761_v38 = vld [vmem:[%s1128_s2] ss:$0 sm:$0xff] }
  0x3e   :  { %859 = vmatpush3.bf16.msra.mxu1 %v942_v23  ;;  %838 = vmatprep.subr.bf16.mxu0 %v943_v24  ;;  %v982_v7 = vld [vmem:[#allocation5 + $0x1b8] sm:$0xff]   ;;  %v69_v15 = vpack.c.bf16 %v61_v13, %v61_v13 }
  0x3f   :  { %860 = vmatprep.subr.bf16.mxu1 %v944_v25  ;;  %v62_v9 = vld [vmem:[#allocation2 + $0x38] sm:$0xff] }
  0x40   :  { %v70_v11 = vpack.c.bf16 %v62_v9, %v62_v9 }
  0x41   :  { %839 = vmatpush3.bf16.msra.mxu0 %v945_v26 }
  0x42   :  { %861 = vmatpush3.bf16.msra.mxu1 %v946_v27  ;;  %840 = vmatprep.subr.bf16.mxu0 %v947_v28 }
  0x43   :  { %862 = vmatprep.subr.bf16.mxu1 %v948_v29 }
  0x45   :  { %841 = vmatpush3.bf16.msra.mxu0 %v949_v30 }
  0x46   :  { %863 = vmatpush3.bf16.msra.mxu1 %v950_v31  ;;  %870 = vmatprep.subr.bf16.mxu0 %v951_v40 }
  0x47   :  { %892 = vmatprep.subr.bf16.mxu1 %v952_v41 }
  0x48   :  { %616 = vmatmul.mubr.bf16.vlgmr.msra.gmra.mrb[0].mxu0 %v63_v37 }
  0x49   :  { %656 = vmatmul.mubr.bf16.vlgmr.msra.gmra.mrb[0].mxu1 %v65_v39  ;;  %871 = vmatpush3.bf16.msra.mxu0 %v953_v42 }
  0x4a   :  { %893 = vmatpush3.bf16.msra.mxu1 %v954_v43  ;;  %872 = vmatprep.subr.bf16.mxu0 %v955_v44 }
  0x4b   :  { %894 = vmatprep.subr.bf16.mxu1 %v956_v45  ;;  %695 = vmatprep.mubr.bf16.mxu0 %v68_v10 }
  0x4c   :  { %735 = vmatprep.mubr.bf16.mxu1 %v70_v11 }
  0x4d   :  { %873 = vmatpush3.bf16.msra.mxu0 %v957_v46 }
  0x4e   :  { %895 = vmatpush3.bf16.msra.mxu1 %v958_v47  ;;  %874 = vmatprep.subr.bf16.mxu0 %v959_v48 }
  0x4f   :  { %896 = vmatprep.subr.bf16.mxu1 %v960_v49 }
  0x51   :  { %875 = vmatpush3.bf16.msra.mxu0 %v961_v50 }
  0x52   :  { %897 = vmatpush3.bf16.msra.mxu1 %v962_v51  ;;  %876 = vmatprep.subr.bf16.mxu0 %v963_v52 }
  0x53   :  { %898 = vmatprep.subr.bf16.mxu1 %v964_v53 }
  0x55   :  { %877 = vmatpush3.bf16.msra.mxu0 %v965_v54 }
  0x56   :  { %899 = vmatpush3.bf16.msra.mxu1 %v966_v55  ;;  %878 = vmatprep.subr.bf16.mxu0 %v967_v56 }
  0x57   :  { %900 = vmatprep.subr.bf16.mxu1 %v968_v57 }
  0x59   :  { %879 = vmatpush3.bf16.msra.mxu0 %v969_v58 }
  0x5a   :  { %901 = vmatpush3.bf16.msra.mxu1 %v970_v59  ;;  %880 = vmatprep.subr.bf16.mxu0 %v971_v60 }
  0x5b   :  { %902 = vmatprep.subr.bf16.mxu1 %v972_v61 }
  0x5d   :  { %881 = vmatpush3.bf16.msra.mxu0 %v973_v62 }
  0x5e   :  { %903 = vmatpush3.bf16.msra.mxu1 %v974_v63  ;;  %882 = vmatprep.subr.bf16.mxu0 %v975_v0 }
  0x5f   :  { %904 = vmatprep.subr.bf16.mxu1 %v976_v1 }
  0x61   :  { %883 = vmatpush3.bf16.msra.mxu0 %v977_v2 }
  0x62   :  { %905 = vmatpush3.bf16.msra.mxu1 %v978_v3  ;;  %884 = vmatprep.subr.bf16.mxu0 %v979_v4 }
  0x63   :  { %906 = vmatprep.subr.bf16.mxu1 %v980_v5 }
  0x65   :  { %885 = vmatpush3.bf16.msra.mxu0 %v981_v6 }
  0x66   :  { %907 = vmatpush3.bf16.msra.mxu1 %v982_v7 }
  0x68   :  { %696 = vmatmul.mubr.bf16.vlgmr.msra.gmra.mrb[4].mxu0 %v67_v14 }
  0x69   :  { %736 = vmatmul.mubr.bf16.vlgmr.msra.gmra.mrb[4].mxu1 %v69_v15 }
 0x11b   :  { %v842_v16 = vpop.f32.mrb[0].mxu0 }
 0x11c   :  { %v864_v17 = vpop.f32.mrb[0].mxu1  ;;  %v843_v18 = vpop.f32.mrb[1].mxu0 }
 0x11d   :  { %v865_v19 = vpop.f32.mrb[1].mxu1  ;;  %v844_v20 = vadd.f32 %v843_v18, %v842_v16  ;;  %v845_v22 = vpop.f32.mrb[2].mxu0 }
 0x11e   :  { %v866_v21 = vadd.f32 %v865_v19, %v864_v17  ;;  %v867_v23 = vpop.f32.mrb[2].mxu1  ;;  %v846_v24 = vpop.f32.mrb[3].mxu0 }
 0x11f   :  { %v868_v25 = vpop.f32.mrb[3].mxu1 }
 0x120   :  { %v658_v26 = vadd.f32 %v866_v21, %v844_v20 }
 0x13b   :  { %v886_v27 = vpop.f32.mrb[4].mxu0 }
 0x13c   :  { %v908_v28 = vpop.f32.mrb[4].mxu1  ;;  %v887_v29 = vpop.f32.mrb[5].mxu0 }
 0x13d   :  { %v888_v30 = vadd.f32 %v887_v29, %v886_v27  ;;  %v909_v31 = vpop.f32.mrb[5].mxu1  ;;  %v889_v32 = vpop.f32.mrb[6].mxu0 }
 0x13e   :  { %v910_v33 = vadd.f32 %v909_v31, %v908_v28  ;;  %v911_v34 = vpop.f32.mrb[6].mxu1  ;;  %v890_v35 = vpop.f32.mrb[7].mxu0 }
 0x13f   :  { %v698_v36 = vadd.f32 %v888_v30, %v658_v26  ;;  %v912_v37 = vpop.f32.mrb[7].mxu1 }
 0x141   :  { %v738_v39 = vadd.f32 %v910_v33, %v698_v36 }
 0x143   :  { %v743_v40 = vadd.f32 %v761_v38, %v738_v39 }
 0x145   :  { %744 = vst [vmem:[#allocation7] sm:$0xff] %v743_v40 }
 0x146   :  { %1038 = shalt.err (!%p1035_p6)
}
 0x147   :  { %s1039_s16 = scalar_lea.hbm %s1129_s3, 128 }
 0x148   :  { %p1040_p7 = scmp.ne.s32.totalorder %s1129_s3, %s1039_s16  ;;  %p1043_p8 = scmp.lt.u32.totalorder %s1039_s16, %s1129_s3 }
 0x14a   :  { %p1045_p9 = pnand %p1043_p8, %p1040_p7 }
 0x14c   :  { %1048 = shalt.err (!%p1045_p9)
}
 0x14d   :  { %754 = dma.vmem_to_hbm [thread:$0]  %s752_s12, 128, %s1129_s3, [#allocation4]  }
 0x14e   :  { %1053 = dma.done.wait [#allocation4], 128  }
 0x14f   :  { %1054 = vsyncadd [#allocation4], 4294967168 }
 0x150   :  { %758 = vsyncpa [#allocation3], 1 }
 0x151   :  { %759 = vsyncpa [#allocation6], 1 }
 0x152   :  { %760 = vsyncpa [#allocation4], 1 }

</bundles_post_ra>
